<compile_context>
chip_gen: v5e
topology: v5e:2x2
jax: 0.10.0
libtpu: 0.0.40
codegen_flags: <defaults>
</compile_context>

<pallas_src>
import jax
import jax.numpy as jnp
from jax.experimental import pallas as pl
from jax.experimental.pallas import tpu as pltpu

_LANES = 128          # TPU lane width (output positions per slab row)
_KPOS = 2 * _LANES    # interleaved flat elements (2 channels) per slab row


def _conv1d_k1_kernel(x_ref, w_ref, b_ref, o_ref):
    # x_ref: (TM, 256) VMEM  -- raw channel-interleaved input rows (streamed)
    # w_ref: (256, 128) VMEM -- block-diagonal deinterleave+conv matrix (resident)
    # b_ref: (1,)  SMEM      -- bias, read as a scalar
    # o_ref: (TM, 128) VMEM  -- lane-dense output rows (unmasked full-width stores)
    y = jnp.dot(x_ref[...], w_ref[...],
                preferred_element_type=jnp.float32,
                precision=jax.lax.Precision.HIGHEST)
    o_ref[...] = (y + b_ref[0]).astype(o_ref.dtype)


def _vmem_capacity_bytes():
    """Physical VMEM of this generation; conservative fallback if unavailable."""
    try:
        info = pltpu.get_tpu_info()
        for attr in ("vmem_capacity_bytes", "vmem_size_bytes", "vmem_bytes"):
            v = getattr(info, attr, None)
            if v:
                return int(v)
    except Exception:
        pass
    return 64 << 20  # v7x per-TensorCore VMEM (smallest of the targets)


def _pick_tile_rows(M, itemsize, vmem_bytes):
    """Largest row tile that keeps double-buffered in+out well inside VMEM,
    while guaranteeing >= 2 grid blocks (TC sharding + DMA/compute overlap)."""
    row_bytes = (_KPOS + _LANES) * itemsize            # one row of input + output
    cap = (vmem_bytes // 5) // (2 * row_bytes)         # ~20% of VMEM, double-buffered
    cap = max(256, min(8192, int(cap)))                # ~8k rows v5e/v6e, ~4k v7x
    cap -= cap % 16                                    # f32 (8,128) & bf16 (16,128) aligned
    if M <= 16:
        return M                                       # too small to split: one full block
    tm = min(cap, ((pl.cdiv(M, 2) + 15) // 16) * 16)   # at least 2 grid blocks
    return min(tm, M)


def conv_1d_forward(x, weight, bias, *, min_pallas_elems=1 << 17):
    """Forward of Conv_1D.

    x:      (B, L, 2)   channels-last input (matches the PyTorch module contract)
    weight: (1, 2, 1)   nn.Conv1d weight
    bias:   (1,)        nn.Conv1d bias
    returns (B, L, 1)
    """
    B, L, C = x.shape
    assert C == 2, "Conv_1D is defined for in_channels=2"
    N = B * L
    f32 = jnp.float32
    w = weight.astype(f32).reshape(C)
    b = bias.astype(f32).reshape(1)

    # Small/medium problems: one fused XLA FMA pass at the minimal 12 B/elem
    # beats any kernel launch + pipeline prologue.
    if N < min_pallas_elems:
        y = x[..., 0].astype(f32) * w[0] + x[..., 1].astype(f32) * w[1] + b[0]
        return y[..., None].astype(x.dtype)

    # ---- zero-copy layout: consume the natural interleaved memory order ----
    # flat = [x0(p0), x1(p0), x0(p1), x1(p1), ...]; one 256-wide row holds the
    # interleaved channels of 128 consecutive positions.  No transpose pass;
    # when N % 128 == 0 even the reshape is free.  We only pad the flat tail to
    # a 128-position boundary (padded positions produce bias-only rows that are
    # sliced off); the possibly-partial last grid block is masked by Pallas.
    M = pl.cdiv(N, _LANES)
    flat = x.reshape(N * C)
    pad = M * _KPOS - N * C
    if pad:
        flat = jnp.pad(flat, (0, pad))
    x2d = flat.reshape(M, _KPOS)

    # Block-diagonal deinterleave+conv matrix: Wm[2j, j] = w0, Wm[2j+1, j] = w1,
    # so (x2d @ Wm)[r, j] = w0*x0 + w1*x1 of flat position r*128 + j (lane-dense).
    # Tiny (128 KiB f32), constant grid index -> fetched once, stays resident.
    Wm = jnp.kron(jnp.eye(_LANES, dtype=f32), w.reshape(C, 1)).astype(x.dtype)

    itemsize = jnp.dtype(x.dtype).itemsize
    vmem_bytes = _vmem_capacity_bytes()
    tm = _pick_tile_rows(M, itemsize, vmem_bytes)
    grid = (pl.cdiv(M, tm),)

    out = pl.pallas_call(
        _conv1d_k1_kernel,
        out_shape=jax.ShapeDtypeStruct((M, _LANES), x.dtype),
        grid=grid,
        in_specs=[
            pl.BlockSpec((tm, _KPOS), lambda i: (i, 0)),          # streaming input
            pl.BlockSpec((_KPOS, _LANES), lambda i: (0, 0)),      # resident weight matrix
            pl.BlockSpec(memory_space=pltpu.MemorySpace.SMEM),    # bias (1,)
        ],
        out_specs=pl.BlockSpec((tm, _LANES), lambda i: (i, 0)),
        compiler_params=pltpu.CompilerParams(
            dimension_semantics=("parallel",),                     # shard rows over TCs (v7x)
            vmem_limit_bytes=int(min(vmem_bytes * 3 // 4, 64 << 20)),
        ),
        cost_estimate=pl.CostEstimate(
            flops=2 * M * _KPOS * _LANES,
            transcendentals=0,
            bytes_accessed=(M * _KPOS + M * _LANES + _KPOS * _LANES) * itemsize + 4,
        ),
    )(x2d, Wm, b)                                                  # (M, 128)

    # Undo the slab view (reshape/slice only — never a transpose pass).
    return out.reshape(M * _LANES)[:N].reshape(B, L, 1)


if __name__ == "__main__":
    key = jax.random.PRNGKey(0)
    kx, kw, kb = jax.random.split(key, 3)

    def reference(x, weight, bias):
        wf = weight.astype(jnp.float32).reshape(2)
        y = (x[..., 0].astype(jnp.float32) * wf[0]
             + x[..., 1].astype(jnp.float32) * wf[1]
             + bias.astype(jnp.float32)[0])
        return y[..., None].astype(x.dtype)

    C_in = 2
    weight = jax.random.normal(kw, (1, C_in, 1), dtype=jnp.float32) * 0.5
    bias = jax.random.normal(kb, (1,), dtype=jnp.float32) * 0.1

    # Main check: Pallas path with >= 2 grid blocks (B*L = 4096 -> M=32, tm=16).
    B, L = 4, 1024
    x = jax.random.normal(kx, (B, L, C_in), dtype=jnp.float32)
    out = jax.block_until_ready(conv_1d_forward(x, weight, bias, min_pallas_elems=0))
    assert out.shape == (B, L, 1)
    assert jnp.allclose(out, reference(x, weight, bias), atol=1e-5, rtol=1e-5)

    # Ragged check: B*L = 600 (not a multiple of 128) forced through the Pallas
    # path to exercise the flat-tail pad + masked edge handling.
    x2 = jax.random.normal(jax.random.PRNGKey(3), (2, 300, C_in), dtype=jnp.float32)
    out2 = jax.block_until_ready(conv_1d_forward(x2, weight, bias, min_pallas_elems=0))
    assert out2.shape == (2, 300, 1)
    assert jnp.allclose(out2, reference(x2, weight, bias), atol=1e-5, rtol=1e-5)

    # Tiny check: falls back to the fused XLA FMA (kernel launch not worth it).
    x3 = jax.random.normal(jax.random.PRNGKey(4), (2, 16, C_in), dtype=jnp.float32)
    out3 = jax.block_until_ready(conv_1d_forward(x3, weight, bias))
    assert out3.shape == (2, 16, 1)
    assert jnp.allclose(out3, reference(x3, weight, bias), atol=1e-5, rtol=1e-5)

    print("KERNEL_OK")
</pallas_src>

<mosaic_0001>
module attributes {stable_mosaic.version = 11 : i64} {
  func.func @_conv1d_k1_kernel(%arg0: i32, %arg1: memref<16x256xf32, #tpu.memory_space<vmem>>, %arg2: memref<256x128xf32, #tpu.memory_space<vmem>>, %arg3: memref<1xf32, #tpu.memory_space<smem>>, %arg4: memref<16x128xf32, #tpu.memory_space<vmem>>) attributes {dimension_semantics = [#tpu.dimension_semantics<parallel>], iteration_bounds = array<i64: 2>, scalar_prefetch = 0 : i64, scratch_operands = 0 : i64, tpu.core_type = #tpu.core_type<tc>, window_params = [{transform_indices = @transform_0, window_bounds = array<i64: 16, 256>}, {pipeline_mode = #tpu.pipeline_mode<synchronous>, transform_indices = @transform_1, window_bounds = array<i64: 256, 128>}, {transform_indices = @transform_2, window_bounds = array<i64: 1>}, {transform_indices = @transform_3, window_bounds = array<i64: 16, 128>}]} {
    %c0 = arith.constant 0 : index
    %c0_0 = arith.constant 0 : index
    %0 = vector.load %arg1[%c0, %c0_0] : memref<16x256xf32, #tpu.memory_space<vmem>>, vector<16x256xf32>
    %c0_1 = arith.constant 0 : index
    %c0_2 = arith.constant 0 : index
    %1 = vector.load %arg2[%c0_1, %c0_2] : memref<256x128xf32, #tpu.memory_space<vmem>>, vector<256x128xf32>
    %cst = arith.constant dense<0.000000e+00> : vector<16x128xf32>
    %2 = tpu.matmul %0, %1, %cst {dimension_numbers = #tpu.dot_dimension_numbers<[1], [0], [0], [1], [0, 0, 1, 1], [], []>, precision = #tpu.contract_precision<fp32>} : vector<16x256xf32>, vector<256x128xf32>, vector<16x128xf32> -> vector<16x128xf32>
    %c0_3 = arith.constant 0 : index
    %3 = memref.load %arg3[%c0_3] : memref<1xf32, #tpu.memory_space<smem>>
    %4 = vector.broadcast %3 : f32 to vector<16x128xf32>
    %5 = arith.addf %2, %4 : vector<16x128xf32>
    %c0_4 = arith.constant 0 : index
    %c0_5 = arith.constant 0 : index
    %6 = vector.load %arg4[%c0_4, %c0_5] : memref<16x128xf32, #tpu.memory_space<vmem>>, vector<16x128xf32>
    tpu.vector_store %arg4[%c0_4, %c0_5], %5 {strides = array<i32>} : memref<16x128xf32, #tpu.memory_space<vmem>>, vector<16x128xf32>,
    return
  }
  func.func @transform_0(%arg0: i32) -> (i32, i32) {
    %c0_i32 = arith.constant 0 : i32
    %c0_i32_0 = arith.constant 0 : i32
    return %arg0, %c0_i32 : i32, i32
  }
  func.func @transform_1(%arg0: i32) -> (i32, i32) {
    %c0_i32 = arith.constant 0 : i32
    %c0_i32_0 = arith.constant 0 : i32
    %c0_i32_1 = arith.constant 0 : i32
    return %c0_i32, %c0_i32_0 : i32, i32
  }
  func.func @transform_2(%arg0: i32) -> i32 {
    %c0_i32 = arith.constant 0 : i32
    %c0_i32_0 = arith.constant 0 : i32
    return %c0_i32 : i32
  }
  func.func @transform_3(%arg0: i32) -> (i32, i32) {
    %c0_i32 = arith.constant 0 : i32
    %c0_i32_0 = arith.constant 0 : i32
    return %arg0, %c0_i32 : i32, i32
  }
}

</mosaic_0001>

<bundles_post_ra>
// kernel: tpu_custom_call.1
= control target key start
LH: loop header
LB: loop body
LE: loop exit
PB: predicated region body
PF: predicated region fallthrough
CT: control target
= control target key end

     0   :  { %s2014_s0 = inlined_call_operand.hbm [shape: f32[32,256], index: 0, kind: input, shape index: {}]   ;;  %s2015_s1 = inlined_call_operand.hbm [shape: f32[256,128], index: 1, kind: input, shape index: {}]   ;;  %s2016_s2 = inlined_call_operand.<no memory space> [shape: f32[1], index: 2, kind: input, shape index: {}]   ;;  %s2017_s3 = inlined_call_operand.hbm [shape: f32[32,128], index: 3, kind: output, shape index: {}]  }
   0x1   :  { %8 = sst [smem:[#allocation2]] %s2016_s2 }
   0x2   :  { %9 = vsyncpa [#allocation4], 0 }
   0x3   :  { %11 = vsyncpa [#allocation4 + $0x1], 0 }
   0x4   :  { %12 = vsyncpa [#allocation7], 0 }
   0x5   :  { %13 = vsyncpa [#allocation5], 0 }
   0x6   :  { %15 = vsyncpa [#allocation5 + $0x1], 0  ;;  %s1340_s14 = smov 0   ;;  %s1342_s15 = smov 0  }
   0x7   :  { %s1344_s16 = smov 0   ;;  %s1346_s17 = smov 0  }
   0x8 LB: > { %s1361_s2 = sadd.s32 4294967295, %s1308_s17   ;;  %s1095_s18 = sadd.s32 4294967294, %s1308_s17   ;;  %s1308_s17 = sphi %s1346_s17, %s2078_s17   ;;  %s1304_s16 = sphi %s1344_s16, %s2077_s16   ;;  %s1300_s15 = sphi %s1342_s15, %s2076_s15   ;;  %s1296_s14 = sphi %s1340_s14, %s2075_s14  }
   0x9   : > { %p41_p0 = scmp.ne.s32.totalorder %s1300_s15, %s1296_s14  ;;  %p42_p1 = scmp.eq.s32.totalorder %s1361_s2, 0 }
   0xa   : > { %p107_p2 = scmp.eq.s32.totalorder %s1361_s2, 1  ;;  %p113_p3 = scmp.eq.s32.totalorder %s1095_s18, 1 }
   0xb   : > { %p1370_p4 = por %p42_p1, %p41_p0  ;;  %p1096_p5 = scmp.ge.s32.totalorder %s1308_s17, 1 }
   0xc   : > { %p1375_p6 = por %p113_p3, %p41_p0  ;;  %p120_p7 = scmp.lt.s32.totalorder %s1308_s17, 3 }
   0xd   : > { %s131_s23 = sshll.u32 %s2015_s1, 4  ;;  %s1310_s25 = smov [#allocation6]   ;;  %s132_s23 = int_to_ptr.hbm [resolvable:$true] %s131_s23 }
   0xe   : > { %p1383_p8 = pnand %p1096_p5, %p120_p7  ;;  %s133_s26 = sshll.u32 %s1310_s25, 4  ;;  %s134_s26 = int_to_ptr.vmem [resolvable:$true] %s133_s26 }
   0xf   : > { %s1393_s27 = sadd.s32 1, %s1308_s17   ;;  %s1311_s28 = smov 128  }
  0x10   : > { %p1123_p9 = pneg %p1383_p8  ;;  %s1312_s29 = smov 8  }
  0x11   : > { %s25_s30 = ssub.s32 %s1308_s17, %s1393_s27  ;;  %s28_s4 = sadd.s32 1, %s1304_s16 }
  0x12   : > { %p1124_p10 = pnand %p1123_p9, %p42_p1  ;;  %p26_p12 = scmp.eq.s32.totalorder %s25_s30, 0 }
  0x13   : > { %p35_p13 = scmp.ne.s32.totalorder %s1304_s16, %s1300_s15  ;;  %p36_p0 = scmp.eq.s32.totalorder %s1308_s17, 0 }
  0x14   : > { %1126 = dma.hbm_to_vmem [thread:$0]  (!%p1124_p10), %s132_s23, 4096, %s134_s26, [#allocation7], %s1311_s28, %s1311_s28, %s1312_s29  }
  0x15   : > { %p1136_p3 = scmp.lt.s32.totalorder %s1308_s17, 2  ;;  %p37_p5 = por %p36_p0, %p35_p13 }
  0x16   : > { %s1403_s5 = scalar_select %p26_p12, %s1304_s16, %s28_s4  }
  0x17   : > { %p1407_p7 = por %p107_p2, %p35_p13  ;;  %s150_s7 = sand.u32 1, %s1304_s16  }
  0x18   : > { %s1113_s8 = sshll.u32 %s1308_s17, 5  ;;  %s1099_s9 = sshll.u32 %s150_s7, 5 }
  0x19   : > { %s160_s12 = scalar_lea.hbm %s2014_s0, %s1113_s8  ;;  %s154_s18 = scalar_lea.vmem [#allocation3], %s1099_s9 }
  0x1a   : > { %s161_s13 = sshll.u32 %s160_s12, 4  ;;  %s163_s21 = sshll.u32 %s154_s18, 4  ;;  %s162_s13 = int_to_ptr.hbm [resolvable:$true] %s161_s13  ;;  %s164_s21 = int_to_ptr.vmem [resolvable:$true] %s163_s21 }
  0x1b   : > { %p1418_p9 = pnand %p1136_p3, %p37_p5  ;;  %s151_s23 = scalar_lea.sflag [#allocation4], %s150_s7 }
  0x1c   : > { %s1208_s25 = sshra.s32 %s162_s13, 4  ;;  %s1215_s30 = scalar_lea.hbm %s2014_s0, 64  ;;  %s1209_s25 = int_to_ptr.hbm [resolvable:$true] %s1208_s25 }
  0x1d   : > { %s1210_s26 = scalar_lea.hbm %s1209_s25, 32  ;;  %p1212_p10 = pneg %p1418_p9 }
  0x1e   : > { %p1211_p2 = scmp.ne.s32.totalorder %s1209_s25, %s1210_s26  ;;  %p1216_p0 = scmp.lt.s32.totalorder %s1209_s25, %s2014_s0 }
  0x1f   : > { %p1217_p3 = scmp.lt.s32.totalorder %s1215_s30, %s1210_s26 }
  0x20   : > { %p1213_p12 = pnand %p1212_p10, %p1211_p2 }
  0x21   : > { %p1218_p5 = por %p1217_p3, %p1216_p0 }
  0x22   : > { %p1214_p13 = pneg %p1213_p12 }
  0x24   : > { %p1219_p11 = pnand %p1218_p5, %p1214_p13 }
  0x26   : > { %1222 = shalt.err (!%p1219_p11)
}
  0x27   : > { %s1313_s7 = smov 256   ;;  %s1314_s9 = smov 16  }
  0x28   : > { %1130 = dma.hbm_to_vmem [thread:$0]  (!%p1418_p9), %s162_s13, 512, %s164_s21, %s151_s23, %s1313_s7, %s1313_s7, %s1314_s9  }
  0x29   : > { %175 = sbr.rel (%p1383_p8) target bundleno = 309 (0x135), region = 32 }
  0x2e   : > { %s1435_s10 = sand.u32 1, %s1300_s15  }
  0x2f   : > { %s1104_s11 = sshll.u32 %s1435_s10, 5  ;;  %s178_s12 = scalar_lea.sflag [#allocation4], %s1435_s10 }
  0x30   : > { %s1439_s18 = scalar_lea.vmem [#allocation3], %s1104_s11 }
  0x31   : > { %1283 = dma.done.wait (%p1370_p4), %s178_s12, 512  }
  0x32   : > { %1285 = vsyncadd (%p1370_p4), %s178_s12, 4294966784 }
  0x33   : > { %1287 = dma.done.wait (%p42_p1), [#allocation7], 4096  }
  0x34   : > { %1289 = vsyncadd (%p42_p1), [#allocation7], 4294963200  ;;  %v231_v0 = vld [vmem:[#allocation6 + $0x78] sm:$0xff]  ;;  %v230_v1 = vld [vmem:[#allocation6 + $0x70] sm:$0xff]  ;;  %s248_s19 = sld [smem:[#allocation2]]  ;;  %s1106_s24 = sshll.u32 %s1435_s10, 4 }
  0x35   : > { %v229_v2 = vld [vmem:[#allocation6 + $0x68] sm:$0xff]  ;;  %v1449_v3 = vand.u32 4294901760, %v231_v0  ;;  %v1451_v4 = vand.u32 4294901760, %v230_v1  ;;  %v228_v6 = vld [vmem:[#allocation6 + $0x60] sm:$0xff]  ;;  %v227_v7 = vld [vmem:[#allocation6 + $0x58] sm:$0xff]  ;;  %s1114_s13 = sshll.u32 %s1361_s2, 4 }
  0x36   : > { %v1453_v5 = vand.u32 4294901760, %v229_v2  ;;  %v226_v8 = vld [vmem:[#allocation6 + $0x50] sm:$0xff]  ;;  %v1455_v9 = vand.u32 4294901760, %v228_v6  ;;  %v1457_v10 = vand.u32 4294901760, %v227_v7  ;;  %v225_v12 = vld [vmem:[#allocation6 + $0x48] sm:$0xff]  ;;  %v224_v13 = vld [vmem:[#allocation6 + $0x40] sm:$0xff]  ;;  %s1008_s23 = scalar_lea.hbm %s2017_s3, %s1114_s13 }
  0x37   : > { %v1459_v11 = vand.u32 4294901760, %v226_v8  ;;  %251 = vmatpush.msra.mxu0 %v1449_v3  ;;  %v1463_v14 = vsub.f32 %v231_v0, %v1449_v3  ;;  %v1466_v15 = vsub.f32 %v230_v1, %v1451_v4  ;;  %464 = vmatpush.msra.mxu3 %v1449_v3  ;;  %v1472_v17 = vand.u32 4294901760, %v225_v12  ;;  %v223_v18 = vld [vmem:[#allocation6 + $0x38] sm:$0xff]  ;;  %v222_v26 = vld [vmem:[#allocation6 + $0x30] sm:$0xff]  ;;  %v221_v36 = vld [vmem:[#allocation6 + $0x28] sm:$0xff]  ;;  %s209_s25 = scalar_lea.vmem [#allocation8], %s1106_s24 }
  0x38   : > { %v1470_v16 = vsub.f32 %v229_v2, %v1453_v5  ;;  %v1475_v19 = vsub.f32 %v228_v6, %v1455_v9  ;;  %v1478_v20 = vsub.f32 %v227_v7, %v1457_v10  ;;  %v1480_v21 = vand.u32 4294901760, %v224_v13  ;;  %v220_v42 = vld [vmem:[#allocation6 + $0x20] sm:$0xff]  ;;  %v219_v48 = vld [vmem:[#allocation6 + $0x18] sm:$0xff]  ;;  %v218_v54 = vld [vmem:[#allocation6 + $0x10] sm:$0xff]  ;;  %s1009_s26 = sshll.u32 %s209_s25, 4  ;;  %s1011_s28 = sshll.u32 %s1008_s23, 4  ;;  %s1010_s26 = int_to_ptr.vmem [resolvable:$true] %s1009_s26  ;;  %s1012_s28 = int_to_ptr.hbm [resolvable:$true] %s1011_s28 }
  0x39   : > { %253 = vmatpush.msra.mxu0 %v1451_v4  ;;  %406 = vmatpush.msra.mxu2 %v1463_v14  ;;  %v301_v22 = vand.u32 4294901760, %v1463_v14  ;;  %v307_v23 = vand.u32 4294901760, %v1466_v15  ;;  %v1488_v25 = vsub.f32 %v226_v8, %v1459_v11  ;;  %v1492_v28 = vand.u32 4294901760, %v223_v18  ;;  %v247_v59 = vld [vmem:[#allocation6 + $0xf8] sm:$0xff]  ;;  %v217_v61 = vld [vmem:[#allocation6 + $0x8] sm:$0xff]  ;;  %v246_v2 = vld [vmem:[#allocation6 + $0xf0] sm:$0xff] }
  0x3a   : > { %v2031_v24 = vand.u32 4294901760, %v1470_v16  ;;  %466 = vmatpush.msra.mxu3 %v1451_v4  ;;  %v2030_v27 = vand.u32 4294901760, %v1475_v19  ;;  %v1495_v29 = vsub.f32 %v225_v12, %v1472_v17  ;;  %v2027_v33 = vand.u32 4294901760, %v1478_v20  ;;  %v216_v7 = vld [vmem:[#allocation6] sm:$0xff]  ;;  %s997_s2 = scalar_lea.sflag [#allocation5], %s1435_s10  ;;  %s1252_s29 = sshra.s32 %s1012_s28, 4  ;;  %s1253_s29 = int_to_ptr.hbm [resolvable:$true] %s1252_s29 }
  0x3b   : > { %255 = vmatpush.msra.mxu0 %v1453_v5  ;;  %409 = vmatpush.msra.mxu2 %v1466_v15  ;;  %v302_v30 = vsub.f32 %v1463_v14, %v301_v22  ;;  %v308_v31 = vsub.f32 %v1466_v15, %v307_v23  ;;  %v1510_v34 = vand.u32 4294901760, %v222_v26  ;;  %v1513_v35 = vsub.f32 %v224_v13, %v1480_v21  ;;  %s1254_s30 = scalar_lea.hbm %s1253_s29, 16  ;;  %s1258_s7 = scalar_lea.hbm %s2017_s3, 32 }
  0x3c   : > { %v314_v32 = vsub.f32 %v1470_v16, %v2031_v24  ;;  %468 = vmatpush.msra.mxu3 %v1453_v5  ;;  %v320_v39 = vsub.f32 %v1475_v19, %v2030_v27  ;;  %v2026_v40 = vand.u32 4294901760, %v1488_v25  ;;  %v2024_v41 = vand.u32 4294901760, %v1495_v29  ;;  %p1255_p1 = scmp.ne.s32.totalorder %s1253_s29, %s1254_s30  ;;  %p1259_p11 = scmp.lt.s32.totalorder %s1253_s29, %s2017_s3 }
  0x3d   : > { %257 = vmatpush.msra.mxu0 %v1455_v9  ;;  %v303_v37 = vand.u32 4294901760, %v302_v30  ;;  %412 = vmatpush.msra.mxu2 %v1470_v16  ;;  %v309_v38 = vand.u32 4294901760, %v308_v31  ;;  %v326_v44 = vsub.f32 %v1478_v20, %v2027_v33  ;;  %v1527_v45 = vand.u32 4294901760, %v221_v36  ;;  %v245_v30 = vld [vmem:[#allocation6 + $0xe8] sm:$0xff]  ;;  %p1260_p9 = scmp.lt.s32.totalorder %s1258_s7, %s1254_s30 }
  0x3e   : > { %470 = vmatpush.msra.mxu3 %v1455_v9  ;;  %v315_v43 = vand.u32 4294901760, %v314_v32  ;;  %v1530_v46 = vsub.f32 %v223_v18, %v1492_v28  ;;  %v2023_v47 = vand.u32 4294901760, %v1513_v35  ;;  %v321_v49 = vand.u32 4294901760, %v320_v39  ;;  %p1256_p4 = pnand %p1255_p1, %p1407_p7 }
  0x3f   : > { %259 = vmatpush.msra.mxu0 %v1457_v10  ;;  %304 = vmatpush.msra.mxu1 %v303_v37  ;;  %v332_v50 = vsub.f32 %v1488_v25, %v2026_v40  ;;  %v1539_v51 = vand.u32 4294901760, %v220_v42  ;;  %v1542_v52 = vsub.f32 %v222_v26, %v1510_v34  ;;  %v338_v53 = vsub.f32 %v1495_v29, %v2024_v41  ;;  %p1261_p2 = por %p1260_p9, %p1259_p11 }
  0x40   : > { %415 = vmatpush.msra.mxu2 %v1475_v19  ;;  %472 = vmatpush.msra.mxu3 %v1457_v10  ;;  %v327_v55 = vand.u32 4294901760, %v326_v44  ;;  %v1550_v56 = vand.u32 4294901760, %v219_v48  ;;  %v2021_v57 = vand.u32 4294901760, %v1530_v46  ;;  %v1554_v58 = vsub.f32 %v221_v36, %v1527_v45  ;;  %p1257_p8 = pneg %p1256_p4 }
  0x41   : > { %261 = vmatpush.msra.mxu0 %v1459_v11  ;;  %310 = vmatpush.msra.mxu1 %v309_v38  ;;  %v344_v60 = vsub.f32 %v1513_v35, %v2023_v47  ;;  %v333_v62 = vand.u32 4294901760, %v332_v50  ;;  %v1562_v63 = vand.u32 4294901760, %v218_v54  ;;  %v2020_v0 = vand.u32 4294901760, %v1542_v52 }
  0x42   : > { %418 = vmatpush.msra.mxu2 %v1478_v20  ;;  %474 = vmatpush.msra.mxu3 %v1459_v11  ;;  %v1566_v1 = vsub.f32 %v220_v42, %v1539_v51  ;;  %v339_v6 = vand.u32 4294901760, %v338_v53  ;;  %v1570_v8 = vand.u32 4294901760, %v247_v59  ;;  %v350_v12 = vsub.f32 %v1530_v46, %v2021_v57  ;;  %v244_v42 = vld [vmem:[#allocation6 + $0xe0] sm:$0xff]  ;;  %v241_v57 = vld [vmem:[#allocation6 + $0xc8] sm:$0xff]  ;;  %p1262_p10 = pnand %p1261_p2, %p1257_p8 }
  0x43   : > { %263 = vmatpush.msra.mxu0 %v1472_v17  ;;  %316 = vmatpush.msra.mxu1 %v315_v43  ;;  %v1576_v13 = vand.u32 4294901760, %v217_v61  ;;  %v2019_v18 = vand.u32 4294901760, %v1554_v58  ;;  %v1580_v26 = vsub.f32 %v219_v48, %v1550_v56  ;;  %v345_v31 = vand.u32 4294901760, %v344_v60 }
  0x44   : > { %421 = vmatpush.msra.mxu2 %v1488_v25  ;;  %476 = vmatpush.msra.mxu3 %v1472_v17  ;;  %v1584_v32 = vand.u32 4294901760, %v246_v2  ;;  %v356_v36 = vsub.f32 %v1542_v52, %v2020_v0  ;;  %v1590_v37 = vand.u32 4294901760, %v216_v7  ;;  %v2018_v38 = vand.u32 4294901760, %v1566_v1 }
  0x45   : > { %265 = vmatpush.msra.mxu0 %v1480_v21  ;;  %322 = vmatpush.msra.mxu1 %v321_v49  ;;  %v1594_v39 = vsub.f32 %v218_v54, %v1562_v63  ;;  %v1599_v43 = vsub.f32 %v247_v59, %v1570_v8  ;;  %v1601_v44 = vand.u32 4294901760, %v245_v30  ;;  %v351_v48 = vand.u32 4294901760, %v350_v12  ;;  %v243_v59 = vld [vmem:[#allocation6 + $0xd8] sm:$0xff] }
  0x46   : > { %424 = vmatpush.msra.mxu2 %v1495_v29  ;;  %478 = vmatpush.msra.mxu3 %v1480_v21  ;;  %2043 = vst [vmem:[#allocation12_spill] sm:$0xff] %v1590_v37  ;;  %v362_v49 = vsub.f32 %v1554_v58, %v2019_v18  ;;  %v2022_v50 = vand.u32 4294901760, %v1580_v26  ;;  %v1609_v53 = vsub.f32 %v217_v61, %v1576_v13  ;;  %v357_v60 = vand.u32 4294901760, %v356_v36 }
  0x47   : > { %267 = vmatpush.msra.mxu0 %v1492_v28  ;;  %328 = vmatpush.msra.mxu1 %v327_v55  ;;  %v1614_v54 = vsub.f32 %v246_v2, %v1584_v32  ;;  %v1616_v55 = vand.u32 4294901760, %v244_v42  ;;  %v2025_v61 = vand.u32 4294901760, %v1594_v39  ;;  %v2028_v2 = vand.u32 4294901760, %v1599_v43 }
  0x48   : > { %427 = vmatpush.msra.mxu2 %v1513_v35  ;;  %480 = vmatpush.msra.mxu3 %v1492_v28  ;;  %v1630_v12 = vsub.f32 %v245_v30, %v1601_v44  ;;  %v363_v36 = vand.u32 4294901760, %v362_v49  ;;  %v1637_v18 = vand.u32 4294901760, %v243_v59  ;;  %v1665_v33 = vand.u32 4294901760, %v241_v57 }
  0x49   : > { %269 = vmatpush.msra.mxu0 %v1510_v34  ;;  %334 = vmatpush.msra.mxu1 %v333_v62  ;;  %v368_v62 = vsub.f32 %v1566_v1, %v2018_v38  ;;  %v374_v38 = vsub.f32 %v1580_v26, %v2022_v50  ;;  %v2032_v30 = vand.u32 4294901760, %v1614_v54  ;;  %v1643_v0 = vsub.f32 %v244_v42, %v1616_v55 }
  0x4a   : > { %430 = vmatpush.msra.mxu2 %v1530_v46  ;;  %482 = vmatpush.msra.mxu3 %v1510_v34  ;;  %v380_v49 = vsub.f32 %v1594_v39, %v2025_v61  ;;  %v674_v42 = vsub.f32 %v1599_v43, %v2028_v2  ;;  %v2034_v41 = vand.u32 4294901760, %v1630_v12  ;;  %v1663_v40 = vsub.f32 %v243_v59, %v1637_v18 }
  0x4b   : > { %271 = vmatpush.msra.mxu0 %v1527_v45  ;;  %340 = vmatpush.msra.mxu1 %v339_v6  ;;  %v1624_v6 = vsub.f32 %v216_v7, %v1590_v37  ;;  %v2029_v7 = vand.u32 4294901760, %v1609_v53  ;;  %v680_v2 = vsub.f32 %v1614_v54, %v2032_v30  ;;  %v2045_v15 = vand.u32 4294901760, %v1470_v16 }
  0x4c   : > { %433 = vmatpush.msra.mxu2 %v1542_v52  ;;  %484 = vmatpush.msra.mxu3 %v1527_v45  ;;  %v675_v30 = vand.u32 4294901760, %v674_v42  ;;  %v2044_v42 = vand.u32 4294901760, %v1643_v0  ;;  %v2047_v16 = vand.u32 4294901760, %v1475_v19  ;;  %v2049_v19 = vand.u32 4294901760, %v1478_v20 }
  0x4d   : > { %273 = vmatpush.msra.mxu0 %v1539_v51  ;;  %346 = vmatpush.msra.mxu1 %v345_v31  ;;  %v242_v31 = vld [vmem:[#allocation6 + $0xd0] sm:$0xff]  ;;  %v2033_v50 = vand.u32 4294901760, %v1624_v6  ;;  %v386_v61 = vsub.f32 %v1609_v53, %v2029_v7  ;;  %v381_v7 = vand.u32 4294901760, %v380_v49 }
  0x4e   : > { %436 = vmatpush.msra.mxu2 %v1554_v58  ;;  %486 = vmatpush.msra.mxu3 %v1539_v51  ;;  %v1650_v47 = vand.u32 4294901760, %v242_v31  ;;  %v238_v49 = vld [vmem:[#allocation6 + $0xb0] sm:$0xff] }
  0x4f   : > { %275 = vmatpush.msra.mxu0 %v1550_v56  ;;  %352 = vmatpush.msra.mxu1 %v351_v48  ;;  %v369_v48 = vand.u32 4294901760, %v368_v62  ;;  %v375_v62 = vand.u32 4294901760, %v374_v38  ;;  %v239_v38 = vld [vmem:[#allocation6 + $0xb8] sm:$0xff]  ;;  %v392_v59 = vsub.f32 %v1624_v6, %v2033_v50  ;;  %v1691_v50 = vsub.f32 %v241_v57, %v1665_v33 }
  0x50   : > { %439 = vmatpush.msra.mxu2 %v1566_v1  ;;  %488 = vmatpush.msra.mxu3 %v1550_v56  ;;  %v1678_v27 = vsub.f32 %v242_v31, %v1650_v47  ;;  %v1693_v14 = vand.u32 4294901760, %v239_v38 }
  0x51   : > { %277 = vmatpush.msra.mxu0 %v1562_v63  ;;  %358 = vmatpush.msra.mxu1 %v357_v60  ;;  %v240_v60 = vld [vmem:[#allocation6 + $0xc0] sm:$0xff] }
  0x52   : > { %442 = vmatpush.msra.mxu2 %v1580_v26  ;;  %490 = vmatpush.msra.mxu3 %v1562_v63  ;;  %v1680_v24 = vand.u32 4294901760, %v240_v60 }
  0x53   : > { %279 = vmatpush.msra.mxu0 %v1576_v13  ;;  %364 = vmatpush.msra.mxu1 %v363_v36  ;;  %v387_v36 = vand.u32 4294901760, %v386_v61  ;;  %v692_v61 = vsub.f32 %v1643_v0, %v2044_v42  ;;  %v236_v42 = vld [vmem:[#allocation6 + $0xa0] sm:$0xff] }
  0x54   : > { %445 = vmatpush.msra.mxu2 %v1594_v39  ;;  %492 = vmatpush.msra.mxu3 %v1576_v13  ;;  %v1704_v31 = vsub.f32 %v240_v60, %v1680_v24  ;;  %v1717_v60 = vsub.f32 %v239_v38, %v1693_v14 }
  0x55   : > { %281 = vmatpush.msra.mxu0 %v1590_v37  ;;  %370 = vmatpush.msra.mxu1 %v369_v48  ;;  %v686_v48 = vsub.f32 %v1630_v12, %v2034_v41  ;;  %v393_v41 = vand.u32 4294901760, %v392_v59 }
  0x56   : > { %448 = vmatpush.msra.mxu2 %v1609_v53  ;;  %494 = vmatpush.msra.mxu3 %v1590_v37  ;;  %v1706_v37 = vand.u32 4294901760, %v238_v49 }
  0x57   : > { %511 = vmatpush.msrb.mxu0 %v301_v22  ;;  %376 = vmatpush.msra.mxu1 %v375_v62  ;;  %v681_v22 = vand.u32 4294901760, %v680_v2  ;;  %v237_v62 = vld [vmem:[#allocation6 + $0xa8] sm:$0xff]  ;;  %v212_v2 = vld [vmem:[%s1439_s18] sm:$0xff] }
  0x58   : > { %451 = vmatpush.msra.mxu2 %v1624_v6  ;;  %676 = vmatpush.msrb.mxu3 %v675_v30  ;;  %v1719_v57 = vand.u32 4294901760, %v237_v62  ;;  %v693_v30 = vand.u32 4294901760, %v692_v61  ;;  %v1731_v38 = vand.u32 4294901760, %v212_v2 }
  0x59   : > { %515 = vmatpush.msrb.mxu0 %v307_v23  ;;  %382 = vmatpush.msra.mxu1 %v381_v7  ;;  %v687_v23 = vand.u32 4294901760, %v686_v48  ;;  %v2046_v7 = vand.u32 4294901760, %v1663_v40 }
  0x5a   : > { %623 = vmatpush.msrb.mxu2 %v1570_v8  ;;  %682 = vmatpush.msrb.mxu3 %v681_v22  ;;  %v2050_v22 = vand.u32 4294901760, %v1691_v50 }
  0x5b   : > { %519 = vmatpush.msrb.mxu0 %v2045_v15  ;;  %388 = vmatpush.msra.mxu1 %v387_v36  ;;  %v698_v59 = vsub.f32 %v1663_v40, %v2046_v7  ;;  %v2048_v36 = vand.u32 4294901760, %v1678_v27  ;;  %v1729_v7 = vsub.f32 %v238_v49, %v1706_v37  ;;  %v1742_v49 = vsub.f32 %v237_v62, %v1719_v57 }
  0x5c   : > { %625 = vmatpush.msrb.mxu2 %v1584_v32  ;;  %688 = vmatpush.msrb.mxu3 %v687_v23  ;;  %v710_v61 = vsub.f32 %v1691_v50, %v2050_v22  ;;  %v2051_v15 = vand.u32 4294901760, %v1488_v25  ;;  %v2052_v23 = vand.u32 4294901760, %v1704_v31  ;;  %v1755_v62 = vsub.f32 %v212_v2, %v1731_v38  ;;  %v234_v22 = vld [vmem:[#allocation6 + $0x90] sm:$0xff] }
  0x5d   : > { %523 = vmatpush.msrb.mxu0 %v2047_v16  ;;  %394 = vmatpush.msra.mxu1 %v393_v41  ;;  %v704_v48 = vsub.f32 %v1678_v27, %v2048_v36  ;;  %v699_v41 = vand.u32 4294901760, %v698_v59  ;;  %v2037_v16 = vand.u32 4294901760, %v1717_v60  ;;  %v235_v36 = vld [vmem:[#allocation6 + $0x98] sm:$0xff]  ;;  %v2053_v25 = vand.u32 4294901760, %v1495_v29 }
  0x5e   : > { %627 = vmatpush.msrb.mxu2 %v1601_v44  ;;  %694 = vmatpush.msrb.mxu3 %v693_v30  ;;  %v716_v59 = vsub.f32 %v1704_v31, %v2052_v23  ;;  %v711_v30 = vand.u32 4294901760, %v710_v61  ;;  %v733_v2 = vand.u32 4294901760, %v1742_v49  ;;  %v1773_v29 = vand.u32 4294901760, %v234_v22  ;;  %v233_v23 = vld [vmem:[#allocation6 + $0x88] sm:$0xff] }
  0x5f   : > { %527 = vmatpush.msrb.mxu0 %v2049_v19  ;;  %582 = vmatpush.msrb.mxu1 %v1449_v3  ;;  %v1747_v3 = vand.u32 4294901760, %v236_v42  ;;  %v705_v20 = vand.u32 4294901760, %v704_v48  ;;  %v2036_v19 = vand.u32 4294901760, %v1729_v7  ;;  %v722_v48 = vsub.f32 %v1717_v60, %v2037_v16 }
  0x60   : > { %629 = vmatpush.msrb.mxu2 %v1616_v55  ;;  %700 = vmatpush.msrb.mxu3 %v699_v41  ;;  %v717_v41 = vand.u32 4294901760, %v716_v59  ;;  %v1791_v59 = vand.u32 4294901760, %v233_v23  ;;  %v2056_v16 = vand.u32 4294901760, %v1542_v52 }
  0x61   : > { %531 = vmatpush.msrb.mxu0 %v2051_v15  ;;  %584 = vmatpush.msrb.mxu1 %v1451_v4  ;;  %v1760_v4 = vand.u32 4294901760, %v235_v36  ;;  %v2054_v15 = vand.u32 4294901760, %v1513_v35  ;;  %v728_v61 = vsub.f32 %v1729_v7, %v2036_v19  ;;  %v214_v35 = vld [vmem:[%s1439_s18 + $0x10] sm:$0xff]  ;;  %v232_v19 = vld [vmem:[#allocation6 + $0x80] sm:$0xff] }
  0x62   : > { %631 = vmatpush.msrb.mxu2 %v1637_v18  ;;  %706 = vmatpush.msrb.mxu3 %v705_v20  ;;  %v734_v20 = vsub.f32 %v1742_v49, %v733_v2  ;;  %v1808_v52 = vand.u32 4294901760, %v232_v19 }
  0x63   : > { %535 = vmatpush.msrb.mxu0 %v2053_v25  ;;  %586 = vmatpush.msrb.mxu1 %v1453_v5  ;;  %v1771_v5 = vsub.f32 %v236_v42, %v1747_v3  ;;  %v284_v25 = vand.u32 4294901760, %v1755_v62  ;;  %v723_v42 = vand.u32 4294901760, %v722_v48 }
  0x64   : > { %633 = vmatpush.msrb.mxu2 %v1650_v47  ;;  %712 = vmatpush.msrb.mxu3 %v711_v30  ;;  %v729_v30 = vand.u32 4294901760, %v728_v61 }
  0x65   : > { %539 = vmatpush.msrb.mxu0 %v2054_v15  ;;  %588 = vmatpush.msrb.mxu1 %v1455_v9  ;;  %v2055_v15 = vand.u32 4294901760, %v1530_v46  ;;  %v1785_v9 = vsub.f32 %v235_v36, %v1760_v4  ;;  %v1798_v46 = vsub.f32 %v234_v22, %v1773_v29  ;;  %v1800_v36 = vand.u32 4294901760, %v214_v35 }
  0x66   : > { %635 = vmatpush.msrb.mxu2 %v1665_v33  ;;  %718 = vmatpush.msrb.mxu3 %v717_v41  ;;  %v285_v48 = vsub.f32 %v1755_v62, %v284_v25  ;;  %v1812_v22 = vsub.f32 %v233_v23, %v1791_v59  ;;  %v2058_v41 = vand.u32 4294901760, %v1566_v1  ;;  %v2059_v23 = vand.u32 4294901760, %v1580_v26 }
  0x67   : > { %543 = vmatpush.msrb.mxu0 %v2055_v15  ;;  %590 = vmatpush.msrb.mxu1 %v1457_v10  ;;  %v739_v10 = vand.u32 4294901760, %v1771_v5  ;;  %v2057_v15 = vand.u32 4294901760, %v1554_v58  ;;  %v751_v58 = vand.u32 4294901760, %v1798_v46  ;;  %v291_v61 = vsub.f32 %v214_v35, %v1800_v36 }
  0x68   : > { %637 = vmatpush.msrb.mxu2 %v1680_v24  ;;  %724 = vmatpush.msrb.mxu3 %v723_v42  ;;  %v286_v42 = vand.u32 4294901760, %v285_v48  ;;  %v1830_v1 = vsub.f32 %v232_v19, %v1808_v52  ;;  %v757_v35 = vand.u32 4294901760, %v1812_v22 }
  0x69   : > { %547 = vmatpush.msrb.mxu0 %v2056_v16  ;;  %592 = vmatpush.msrb.mxu1 %v1459_v11  ;;  %v745_v11 = vand.u32 4294901760, %v1785_v9  ;;  %v735_v16 = vand.u32 4294901760, %v734_v20  ;;  %v213_v20 = vld [vmem:[%s1439_s18 + $0x8] sm:$0xff]  ;;  %v292_v48 = vand.u32 4294901760, %v291_v61 }
  0x6a   : > { %639 = vmatpush.msrb.mxu2 %v1693_v14  ;;  %730 = vmatpush.msrb.mxu3 %v729_v30  ;;  %v2060_v30 = vand.u32 4294901760, %v1594_v39  ;;  %v1842_v19 = vand.u32 4294901760, %v213_v20  ;;  %v763_v39 = vand.u32 4294901760, %v1830_v1 }
  0x6b   : > { %551 = vmatpush.msrb.mxu0 %v2057_v15  ;;  %594 = vmatpush.msrb.mxu1 %v1472_v17  ;;  %v740_v17 = vsub.f32 %v1771_v5, %v739_v10 }
  0x6c   : > { %641 = vmatpush.msrb.mxu2 %v1706_v37  ;;  %736 = vmatpush.msrb.mxu3 %v735_v16 }
  0x6d   : > { %555 = vmatpush.msrb.mxu0 %v2058_v41  ;;  %596 = vmatpush.msrb.mxu1 %v1480_v21  ;;  %v746_v21 = vsub.f32 %v1785_v9, %v745_v11  ;;  %v741_v26 = vand.u32 4294901760, %v740_v17  ;;  %v1857_v41 = vsub.f32 %v213_v20, %v1842_v19 }
  0x6e   : > { %643 = vmatpush.msrb.mxu2 %v1719_v57  ;;  %287 = vmatmul.f32.vlgmr.msra.gmra.mxu0 %v286_v42 }
  0x6f   : > { %559 = vmatpush.msrb.mxu0 %v2059_v23  ;;  %598 = vmatpush.msrb.mxu1 %v1492_v28  ;;  %v752_v28 = vsub.f32 %v1798_v46, %v751_v58  ;;  %v747_v15 = vand.u32 4294901760, %v746_v21  ;;  %v656_v42 = vand.u32 4294901760, %v1857_v41  ;;  %v2063_v21 = vand.u32 4294901760, %v1599_v43 }
  0x70   : > { %454 = vmatmul.f32.vlgmr.msra.gmra.mxu2 %v1755_v62  ;;  %498 = vmatmul.f32.vlgmr.msra.gmra.mxu3 %v284_v25  ;;  %v2061_v62 = vand.u32 4294901760, %v1609_v53  ;;  %v293_v25 = vsub.f32 %v291_v61, %v292_v48  ;;  %v2062_v53 = vand.u32 4294901760, %v1624_v6 }
  0x71   : > { %563 = vmatpush.msrb.mxu0 %v2060_v30  ;;  %600 = vmatpush.msrb.mxu1 %v1510_v34  ;;  %v758_v34 = vsub.f32 %v1812_v22, %v757_v35  ;;  %v753_v16 = vand.u32 4294901760, %v752_v28 }
  0x72   : > { %645 = vmatpush.msrb.mxu2 %v1747_v3  ;;  %742 = vmatpush.msrb.mxu3 %v741_v26  ;;  %v294_v6 = vand.u32 4294901760, %v293_v25 }
  0x73   : > { %567 = vmatpush.msrb.mxu0 %v2061_v62  ;;  %602 = vmatpush.msrb.mxu1 %v1527_v45  ;;  %v764_v45 = vsub.f32 %v1830_v1, %v763_v39  ;;  %v759_v17 = vand.u32 4294901760, %v758_v34 }
  0x74   : > { %647 = vmatpush.msrb.mxu2 %v1760_v4  ;;  %396 = vmatmul.f32.vlgmr.msra.gmra.mxu1 %v1731_v38 }
  0x75   : > { %571 = vmatpush.msrb.mxu0 %v2062_v53  ;;  %604 = vmatpush.msrb.mxu1 %v1539_v51  ;;  %v215_v51 = vld [vmem:[%s1439_s18 + $0x18] sm:$0xff]  ;;  %v765_v23 = vand.u32 4294901760, %v764_v45 }
  0x76   : > { %649 = vmatpush.msrb.mxu2 %v1773_v29  ;;  %748 = vmatpush.msrb.mxu3 %v747_v15 }
  0x77   : > { %778 = vmatpush.msra.mxu0 %v1599_v43  ;;  %606 = vmatpush.msrb.mxu1 %v1550_v56  ;;  %v1872_v56 = vand.u32 4294901760, %v215_v51  ;;  %v2066_v43 = vand.u32 4294901760, %v1630_v12 }
  0x78   : > { %651 = vmatpush.msrb.mxu2 %v1791_v59  ;;  %754 = vmatpush.msrb.mxu3 %v753_v16 }
  0x79   : > { %781 = vmatpush.msra.mxu0 %v1614_v54  ;;  %459 = vmatmul.f32.gmra.mxu2 %v291_v61  ;;  %v657_v61 = vsub.f32 %v1857_v41, %v656_v42  ;;  %v1885_v20 = vsub.f32 %v215_v51, %v1872_v56 }
  0x7a   : > { %608 = vmatpush.msrb.mxu1 %v1562_v63  ;;  %653 = vmatpush.msrb.mxu2 %v1808_v52  ;;  %v2064_v63 = vand.u32 4294901760, %v1614_v54  ;;  %v2067_v54 = vand.u32 4294901760, %v1643_v0 }
  0x7b   : > { %760 = vmatpush.msrb.mxu3 %v759_v17  ;;  %784 = vmatpush.msra.mxu0 %v1630_v12  ;;  %v658_v30 = vand.u32 4294901760, %v657_v61  ;;  %v664_v26 = vand.u32 4294901760, %v1885_v20 }
  0x7c   : > { %883 = vmatpush.msra.mxu2 %v2063_v21  ;;  %295 = vmatmul.f32.gmra.mxu0 %v294_v6 }
  0x7d   : > { %504 = vmatmul.f32.gmra.mxu3 %v292_v48  ;;  %610 = vmatpush.msrb.mxu1 %v1576_v13  ;;  %v2065_v13 = vld [vmem:[#allocation12_spill] sm:$0xff] }
  0x7e   : > { %766 = vmatpush.msrb.mxu3 %v765_v23  ;;  %787 = vmatpush.msra.mxu0 %v1643_v0  ;;  %v665_v0 = vsub.f32 %v1885_v20, %v664_v26 }
  0x7f   : > { %887 = vmatpush.msra.mxu2 %v2064_v63  ;;  %400 = vmatmul.f32.gmra.mxu1 %v1800_v36 }
  0x80   : > { %954 = vmatpush.msra.mxu3 %v1570_v8  ;;  %790 = vmatpush.msra.mxu0 %v1663_v40 }
  0x81   : > { %612 = vmatpush.msrb.mxu1 %v2065_v13  ;;  %891 = vmatpush.msra.mxu2 %v2066_v43 }
  0x82   : > { %956 = vmatpush.msra.mxu3 %v1584_v32  ;;  %793 = vmatpush.msra.mxu0 %v1678_v27 }
  0x83   : > { %836 = vmatpush.msra.mxu1 %v1570_v8  ;;  %895 = vmatpush.msra.mxu2 %v2067_v54  ;;  %v2068_v8 = vand.u32 4294901760, %v1663_v40  ;;  %v666_v40 = vand.u32 4294901760, %v665_v0 }
  0x84   : > { %958 = vmatpush.msra.mxu3 %v1601_v44  ;;  %659 = vmatmul.f32.vlgmr.msrb.gmra.mxu2 %v658_v30 }
  0x85   : > { %838 = vmatpush.msra.mxu1 %v1584_v32  ;;  %796 = vmatpush.msra.mxu0 %v1691_v50  ;;  %v2069_v32 = vand.u32 4294901760, %v1678_v27  ;;  %v2071_v27 = vand.u32 4294901760, %v1704_v31 }
  0x86   : > { %899 = vmatpush.msra.mxu2 %v2068_v8  ;;  %960 = vmatpush.msra.mxu3 %v1616_v55 }
  0x87   : > { %840 = vmatpush.msra.mxu1 %v1601_v44  ;;  %573 = vmatmul.f32.vlgmr.msrb.gmra.mxu0 %v1731_v38  ;;  %v2070_v44 = vand.u32 4294901760, %v1691_v50  ;;  %v249_v50 = vstv %s248_s19 }
  0x88   : > { %768 = vmatmul.f32.vlgmr.msrb.gmra.mxu3 %v1842_v19  ;;  %799 = vmatpush.msra.mxu0 %v1704_v31 }
  0x89   : > { %842 = vmatpush.msra.mxu1 %v1616_v55  ;;  %903 = vmatpush.msra.mxu2 %v2069_v32 }
  0x8a   : > { %962 = vmatpush.msra.mxu3 %v1637_v18  ;;  %614 = vmatmul.f32.vlgmr.msrb.gmra.mxu1 %v1731_v38 }
  0x8b   : > { %802 = vmatpush.msra.mxu0 %v1717_v60  ;;  %844 = vmatpush.msra.mxu1 %v1637_v18  ;;  %v2072_v18 = vand.u32 4294901760, %v1717_v60 }
  0x8c   : > { %907 = vmatpush.msra.mxu2 %v2070_v44  ;;  %964 = vmatpush.msra.mxu3 %v1650_v47 }
  0x8d   : > { %805 = vmatpush.msra.mxu0 %v1729_v7  ;;  %846 = vmatpush.msra.mxu1 %v1650_v47  ;;  %v2073_v47 = vand.u32 4294901760, %v1729_v7 }
  0x8e   : > { %911 = vmatpush.msra.mxu2 %v2071_v27  ;;  %966 = vmatpush.msra.mxu3 %v1665_v33 }
  0x8f   : > { %667 = vmatmul.f32.gmra.mxu2 %v666_v40  ;;  %808 = vmatpush.msra.mxu0 %v1742_v49 }
  0x90   : > { %848 = vmatpush.msra.mxu1 %v1665_v33  ;;  %915 = vmatpush.msra.mxu2 %v2072_v18 }
  0x91   : > { %968 = vmatpush.msra.mxu3 %v1680_v24  ;;  %577 = vmatmul.f32.gmra.mxu0 %v1800_v36 }
  0x92   : > { %772 = vmatmul.f32.gmra.mxu3 %v1872_v56  ;;  %811 = vmatpush.msra.mxu0 %v1771_v5 }
  0x93   : > { %850 = vmatpush.msra.mxu1 %v1680_v24  ;;  %919 = vmatpush.msra.mxu2 %v2073_v47 }
  0x94   : > { %970 = vmatpush.msra.mxu3 %v1693_v14  ;;  %618 = vmatmul.f32.gmra.mxu1 %v1800_v36 }
  0x95   : > { %814 = vmatpush.msra.mxu0 %v1785_v9  ;;  %852 = vmatpush.msra.mxu1 %v1693_v14 }
  0x96   : > { %923 = vmatpush.msra.mxu2 %v733_v2  ;;  %972 = vmatpush.msra.mxu3 %v1706_v37 }
  0x97   : > { %817 = vmatpush.msra.mxu0 %v1798_v46  ;;  %854 = vmatpush.msra.mxu1 %v1706_v37 }
  0x98   : > { %927 = vmatpush.msra.mxu2 %v739_v10  ;;  %974 = vmatpush.msra.mxu3 %v1719_v57 }
  0x99   : > { %820 = vmatpush.msra.mxu0 %v1812_v22  ;;  %856 = vmatpush.msra.mxu1 %v1719_v57 }
  0x9a   : > { %931 = vmatpush.msra.mxu2 %v745_v11  ;;  %976 = vmatpush.msra.mxu3 %v1747_v3 }
  0x9b   : > { %823 = vmatpush.msra.mxu0 %v1830_v1  ;;  %858 = vmatpush.msra.mxu1 %v1747_v3 }
  0x9c   : > { %935 = vmatpush.msra.mxu2 %v751_v58  ;;  %978 = vmatpush.msra.mxu3 %v1760_v4 }
  0x9d   : > { %826 = vmatmul.f32.vlgmr.msra.gmra.mxu0 %v1857_v41  ;;  %860 = vmatpush.msra.mxu1 %v1760_v4 }
  0x9e   : > { %939 = vmatpush.msra.mxu2 %v757_v35  ;;  %980 = vmatpush.msra.mxu3 %v1773_v29 }
  0x9f   : > { %862 = vmatpush.msra.mxu1 %v1773_v29 }
  0xa0   : > { %943 = vmatpush.msra.mxu2 %v763_v39  ;;  %982 = vmatpush.msra.mxu3 %v1791_v59 }
  0xa1   : > { %945 = vmatmul.f32.vlgmr.msra.gmra.mxu2 %v1842_v19  ;;  %864 = vmatpush.msra.mxu1 %v1791_v59 }
  0xa2   : > { %984 = vmatpush.msra.mxu3 %v1808_v52 }
  0xa3   : > { %986 = vmatmul.f32.vlgmr.msra.gmra.mxu3 %v1842_v19  ;;  %866 = vmatpush.msra.mxu1 %v1808_v52 }
  0xa4   : > { %870 = vmatmul.f32.vlgmr.msra.gmra.mxu1 %v656_v42 }
  0xa5   : > { %831 = vmatmul.f32.gmra.mxu0 %v1885_v20 }
  0xa9   : > { %949 = vmatmul.f32.gmra.mxu2 %v1872_v56 }
  0xab   : > { %990 = vmatmul.f32.gmra.mxu3 %v1872_v56 }
  0xac   : > { %876 = vmatmul.f32.gmra.mxu1 %v664_v26 }
  0xeb   : > { %v288_v24 = vpop.f32.mrf.mxu0 }
  0xec   : > { %v289_v31 = vadd.f32 %v288_v24, %v249_v50 }
  0xf1   : > { %v397_v33 = vpop.f32.mrf.mxu1 }
  0xf2   : > { %v398_v57 = vadd.f32 %v397_v33, %v289_v31 }
  0xf3   : > { %v455_v37 = vpop.f32.mrf.mxu2  ;;  %v499_v12 = vpop.f32.mrf.mxu3 }
  0xf4   : > { %v456_v38 = vadd.f32 %v455_v37, %v398_v57 }
  0xf6   : > { %v500_v4 = vadd.f32 %v499_v12, %v456_v38 }
  0xf9   : > { %v296_v55 = vpop.f32.mrf.mxu0 }
  0xfa   : > { %v297_v49 = vadd.f32 %v296_v55, %v249_v50 }
  0xfc   : > { %v401_v14 = vpop.f32.mrf.mxu1  ;;  %v460_v60 = vpop.f32.mrf.mxu2 }
  0xfd   : > { %v402_v2 = vadd.f32 %v401_v14, %v297_v49 }
  0xff   : > { %v461_v29 = vadd.f32 %v460_v60, %v402_v2 }
 0x100   : > { %v505_v3 = vpop.f32.mrf.mxu3 }
 0x101   : > { %v506_v36 = vadd.f32 %v505_v3, %v461_v29 }
 0x104   : > { %v574_v7 = vpop.f32.mrf.mxu0 }
 0x105   : > { %v575_v9 = vadd.f32 %v574_v7, %v500_v4 }
 0x107   : > { %v615_v5 = vpop.f32.mrf.mxu1  ;;  %v660_v59 = vpop.f32.mrf.mxu2 }
 0x108   : > { %v616_v11 = vadd.f32 %v615_v5, %v575_v9 }
 0x10a   : > { %v661_v22 = vadd.f32 %v660_v59, %v616_v11 }
 0x10b   : > { %v769_v46 = vpop.f32.mrf.mxu3 }
 0x10c   : > { %v770_v28 = vadd.f32 %v769_v46, %v661_v22 }
 0x10e   : > { %v578_v10 = vpop.f32.mrf.mxu0 }
 0x10f   : > { %v579_v58 = vadd.f32 %v578_v10, %v506_v36 }
 0x111   : > { %v619_v52 = vpop.f32.mrf.mxu1 }
 0x112   : > { %v668_v35 = vpop.f32.mrf.mxu2  ;;  %v620_v48 = vadd.f32 %v619_v52, %v579_v58 }
 0x114   : > { %v669_v39 = vadd.f32 %v668_v35, %v620_v48 }
 0x115   : > { %v773_v19 = vpop.f32.mrf.mxu3 }
 0x116   : > { %v774_v41 = vadd.f32 %v773_v19, %v669_v39 }
 0x11a   : > { %v827_v1 = vpop.f32.mrf.mxu0 }
 0x11b   : > { %v828_v62 = vadd.f32 %v827_v1, %v770_v28 }
 0x121   : > { %v871_v15 = vpop.f32.mrf.mxu1 }
 0x122   : > { %v872_v34 = vadd.f32 %v871_v15, %v828_v62  ;;  %v832_v25 = vpop.f32.mrf.mxu0 }
 0x123   : > { %v833_v6 = vadd.f32 %v832_v25, %v774_v41 }
 0x124   : > { %v946_v16 = vpop.f32.mrf.mxu2 }
 0x125   : > { %v947_v53 = vadd.f32 %v946_v16, %v872_v34 }
 0x126   : > { %v987_v45 = vpop.f32.mrf.mxu3 }
 0x127   : > { %v988_v17 = vadd.f32 %v987_v45, %v947_v53 }
 0x129   : > { %994 = vst [vmem:[%s209_s25] sm:$0xff] %v988_v17  ;;  %v877_v51 = vpop.f32.mrf.mxu1 }
 0x12a   : > { %v878_v42 = vadd.f32 %v877_v51, %v833_v6 }
 0x12c   : > { %v950_v23 = vpop.f32.mrf.mxu2 }
 0x12d   : > { %v951_v56 = vadd.f32 %v950_v23, %v878_v42 }
 0x12e   : > { %v991_v21 = vpop.f32.mrf.mxu3 }
 0x12f   : > { %v992_v61 = vadd.f32 %v991_v21, %v951_v56 }
 0x131   : > { %995 = vst [vmem:[%s209_s25 + $0x8] sm:$0xff] %v992_v61 }
 0x132   : > { %1265 = shalt.err (!%p1262_p10)
}
 0x133   : > { %s1315_s10 = smov 128   ;;  %s1316_s12 = smov 8  }
 0x134   : > { %1121 = dma.vmem_to_hbm [thread:$0]  (%p1407_p7), %s1010_s26, 256, %s1012_s28, %s997_s2, %s1315_s10, %s1315_s10, %s1316_s12  }
 0x135 PF: > { %s1026_s18 = sand.u32 1, %s1296_s14   ;;  %p2074_p12 = scmp.ge.s32.totalorder %s1308_s17, 2 }
 0x136   : > { %s1027_s19 = scalar_lea.sflag [#allocation5], %s1026_s18 }
 0x137   : > { %p1132_p13 = pnand %p2074_p12, %p1375_p6 }
 0x139   : > { %p1133_p0 = pneg %p1132_p13 }
 0x13b   : > { %1291 = dma.done.wait (%p1133_p0), %s1027_s19, 256  }
 0x13c   : > { %1293 = vsyncadd (%p1133_p0), %s1027_s19, 4294967040  ;;  %p18_p3 = scmp.ge.s32.totalorder %s1393_s27, 4   ;;  %s2075_s14 = smov %s1300_s15 }
 0x13d   : > { %s2076_s15 = smov %s1304_s16  ;;  %s2077_s16 = smov %s1403_s5 }
 0x13e   : > { %s2078_s17 = smov %s1393_s27  ;;  %20 = sbr.rel (!%p18_p3) target bundleno = 8 (0x8), region = 81 }
 0x143   :  { %1033 = vsyncpa [#allocation4], 1 }
 0x144   :  { %1035 = vsyncpa [#allocation4 + $0x1], 1 }
 0x145   :  { %1036 = vsyncpa [#allocation7], 1 }
 0x146   :  { %1037 = vsyncpa [#allocation5], 1 }
 0x147   :  { %1039 = vsyncpa [#allocation5 + $0x1], 1 }

</bundles_post_ra>
